<compile_context>
chip_gen: v7x
topology: tpu7x:2x2x1
jax: 0.10.0
libtpu: 0.0.40
codegen_flags: <defaults>
</compile_context>

<pallas_src>
import functools

import jax
import jax.numpy as jnp
from jax.experimental import pallas as pl
from jax.experimental.pallas import tpu as pltpu

NUM_HEADS = 3
NEG_SLOPE = 0.2
EMB_ROWS = 22754
NEG_BIG = 1e30
LANE = 128


def _device_kind():
    try:
        return jax.devices()[0].device_kind.lower()
    except Exception:
        return ""


_KIND = _device_kind()
# bf16 VPU exists on v6e / v7x; on v5e (and older) bf16 elementwise decomposes.
_BF16_VPU = any(s in _KIND for s in ("v6", "v7", "7x"))
# v5e/v6e have 128 MiB physical VMEM; v7x only 64 MiB per TensorCore -> stay low.
_BIG_VMEM = any(s in _KIND for s in ("v5", "v6"))
_VMEM_LIMIT = (96 if _BIG_VMEM else 32) * 1024 * 1024
_TILE_BUDGET = (48 if _BIG_VMEM else 18) * 1024 * 1024


def _round_up(v, m):
    return ((v + m - 1) // m) * m


def _choose_row_tile(np_rows, c):
    """Largest row tile (divisor of np_rows, >=32 for the int8 mask tiling)
    whose pipeline footprint (double-buffered bf16 ew + int8 mask streams plus
    ~4 f32 [T,NP] temps) fits the budget after subtracting the resident
    (H,NP,C) bf16 xh and (H,NP) f32 asT blocks.  Always leaves >=2 grid steps
    so the 'parallel' axis can span both v7x TensorCores."""
    resident = NUM_HEADS * np_rows * (2 * c + 4) + 8 * c
    avail = max(_TILE_BUDGET - resident, 0)
    per_row = np_rows * (2 * 2 + 1 * 2 + 4 * 4)   # ew(bf16,x2) + mask(i8,x2) + f32 temps
    tile = 32
    for t in (1024, 512, 256, 128, 64, 32):
        if np_rows % t == 0 and t * per_row <= avail:
            tile = t
            break
    if np_rows // tile < 2 and np_rows // 2 >= 32:   # keep both TCs busy (v7x)
        tile = np_rows // 2
    return tile


def _proj_kernel(x_ref, wf_ref, bf_ref, xh_ref, ad_ref, as_ref, *, c):
    # Single fused MXU pass: y = x @ W_fused + b_fused, y is [tile, 128-lane].
    # Columns: [0, H*C) = per-head xh, [H*C, H*C+H) = a_dst scores,
    #          [H*C+H, H*C+2H) = a_src scores, rest zero padding.
    y = jnp.dot(x_ref[...], wf_ref[...],
                preferred_element_type=jnp.float32) + bf_ref[...]
    for h in range(NUM_HEADS):                       # head-major bf16, no XLA transpose
        xh_ref[h] = y[:, h * c:(h + 1) * c].astype(jnp.bfloat16)
    hc = NUM_HEADS * c
    ad_ref[...] = y[:, hc:hc + NUM_HEADS]
    as_ref[...] = y[:, hc + NUM_HEADS:hc + 2 * NUM_HEADS]


def _gat_attn_kernel(ad_ref, asT_ref, xh3_ref, ew_ref, mask_ref, bmean_ref,
                     out_ref, *, bf16_mul):
    # Per destination-row tile: masked softmax over sources + weighted aggregation.
    # Additive edge bias (0 on edge, -1e30 off edge) derived once per tile.
    bias = (mask_ref[...].astype(jnp.float32) - 1.0) * NEG_BIG     # [T, NP]
    ew = ew_ref[...] if bf16_mul else ew_ref[...].astype(jnp.float32)
    ad = ad_ref[...]                                               # [T, H]
    asT = asT_ref[...]                                             # [H, NP]
    acc = jnp.zeros(out_ref.shape, jnp.float32)

    for h in range(NUM_HEADS):                                     # static unroll
        e = ad[:, h:h + 1] + asT[h:h + 1, :]                       # [T, NP]
        e = jnp.maximum(e, NEG_SLOPE * e) + bias                   # leaky_relu + mask
        m = jnp.max(e, axis=1, keepdims=True)                      # finite (bias finite)
        p = jnp.exp(e - m)                                         # off-edge underflows to 0
        denom = jnp.sum(p, axis=1, keepdims=True)                  # >= 1 on real rows
        if bf16_mul:                                               # v6e/v7x: packed bf16 VPU
            wmsg = p.astype(jnp.bfloat16) * ew
        else:                                                      # v5e: f32 VPU only
            wmsg = (p * ew).astype(jnp.bfloat16)
        # normalize AFTER the matmul: scale the [T, C] result, not [T, NP] probs
        acc = acc + pl.reciprocal(denom, approx=True) * jnp.dot(
            wmsg, xh3_ref[h], preferred_element_type=jnp.float32)

    out_ref[...] = acc * jnp.float32(1.0 / NUM_HEADS) + bmean_ref[...]


def gat_ho_forward(x, edge_index, edge_weight_idx, ddi_weight, params):
    """x: [N, Cin] f32; edge_index: [2, E] int32 (row0=src, row1=dst);
    edge_weight_idx: [E, 1] int32 indices into the edge embedding;
    ddi_weight: [E] f32."""
    N, Cin = x.shape
    C = params["w_lin"].shape[1]
    H = NUM_HEADS
    NP = max(LANE, _round_up(N, LANE))
    tile = _choose_row_tile(NP, C)
    FP = _round_up(H * C + 2 * H, LANE)          # fused-projection lane width

    # ---- JAX glue: embedding gather, dense scatter in storage dtype ----
    ew_edge = params["edge_emb"][edge_weight_idx[:, 0], 0] - ddi_weight      # [E]
    src, dst = edge_index[0], edge_index[1]
    ew_mat = (jnp.zeros((NP, NP), jnp.bfloat16)
              .at[dst, src].set(ew_edge.astype(jnp.bfloat16)))               # bf16 stream
    mask_mat = (jnp.zeros((NP, NP), jnp.int8)
                .at[dst, src].set(jnp.ones_like(src, dtype=jnp.int8)))       # int8 stream

    x_pad = jnp.zeros((NP, Cin), jnp.float32).at[:N].set(x)

    # ---- fold lin + all-head W + a_dst/a_src into one [Cin, FP] weight ----
    w_all = jnp.concatenate([params["w_head"][h] for h in range(H)], axis=1)  # [C, H*C]
    a_dst_bd = jnp.zeros((H * C, H), jnp.float32)
    a_src_bd = jnp.zeros((H * C, H), jnp.float32)
    for h in range(H):
        a_dst_bd = a_dst_bd.at[h * C:(h + 1) * C, h].set(params["a_dst"][h][0])
        a_src_bd = a_src_bd.at[h * C:(h + 1) * C, h].set(params["a_src"][h][0])
    big = jnp.concatenate([w_all, w_all @ a_dst_bd, w_all @ a_src_bd], axis=1)  # [C, H*C+2H]
    w_fused = jnp.zeros((Cin, FP), jnp.float32).at[:, :H * C + 2 * H].set(
        params["w_lin"] @ big)
    b_fused = jnp.zeros((1, FP), jnp.float32).at[:, :H * C + 2 * H].set(
        params["b_lin"] @ big)
    b_mean = jnp.mean(params["b_head"], axis=0)                               # [1, C]

    full = lambda shape: pl.BlockSpec(shape, lambda i, _s=shape: (0,) * len(_s))
    cparams = pltpu.CompilerParams(dimension_semantics=("parallel",),
                                   vmem_limit_bytes=_VMEM_LIMIT)

    # ---- kernel 1: single fused projection matmul, head-major bf16 xh out ----
    xh_heads, ad_all, as_all = pl.pallas_call(
        functools.partial(_proj_kernel, c=C),
        out_shape=(jax.ShapeDtypeStruct((H, NP, C), jnp.bfloat16),
                   jax.ShapeDtypeStruct((NP, H), jnp.float32),
                   jax.ShapeDtypeStruct((NP, H), jnp.float32)),
        grid=(NP // tile,),
        in_specs=[pl.BlockSpec((tile, Cin), lambda i: (i, 0)),
                  full((Cin, FP)), full((1, FP))],
        out_specs=(pl.BlockSpec((H, tile, C), lambda i: (0, i, 0)),
                   pl.BlockSpec((tile, H), lambda i: (i, 0)),
                   pl.BlockSpec((tile, H), lambda i: (i, 0))),
        compiler_params=cparams,
    )(x_pad, w_fused, b_fused)

    a_sT = as_all.T                                   # tiny [H, NP] transpose in glue

    # ---- kernel 2: tiled attention + aggregation over destination-row tiles ----
    out_pad = pl.pallas_call(
        functools.partial(_gat_attn_kernel, bf16_mul=_BF16_VPU),
        out_shape=jax.ShapeDtypeStruct((NP, C), jnp.float32),
        grid=(NP // tile,),
        in_specs=[pl.BlockSpec((tile, H), lambda i: (i, 0)),   # dst attention scores
                  full((H, NP)),                               # src attention scores
                  full((H, NP, C)),                            # xh per head (bf16)
                  pl.BlockSpec((tile, NP), lambda i: (i, 0)),  # edge weights (bf16)
                  pl.BlockSpec((tile, NP), lambda i: (i, 0)),  # adjacency mask (int8)
                  full((1, C))],                               # mean head bias
        out_specs=pl.BlockSpec((tile, C), lambda i: (i, 0)),
        compiler_params=cparams,
    )(ad_all, a_sT, xh_heads, ew_mat, mask_mat, b_mean)

    return out_pad[:N]


def gat_ho_reference(x, edge_index, edge_weight_idx, ddi_weight, params):
    """Pure-JAX f32 reference with identical dense-graph semantics."""
    N, _ = x.shape
    xl = x @ params["w_lin"] + params["b_lin"]
    ew_edge = params["edge_emb"][edge_weight_idx[:, 0], 0] - ddi_weight
    src, dst = edge_index[0], edge_index[1]
    ew_mat = jnp.zeros((N, N), jnp.float32).at[dst, src].set(ew_edge)
    mask = jnp.zeros((N, N), jnp.float32).at[dst, src].set(1.0)
    outs = []
    for h in range(NUM_HEADS):
        xh = xl @ params["w_head"][h]
        a_d = xh @ params["a_dst"][h][0]
        a_s = xh @ params["a_src"][h][0]
        e = a_d[:, None] + a_s[None, :]
        e = jnp.where(e > 0, e, NEG_SLOPE * e)
        e = jnp.where(mask > 0, e, -jnp.inf)
        m = jnp.maximum(jnp.max(e, axis=1, keepdims=True), -1e30)
        p = jnp.where(mask > 0, jnp.exp(e - m), 0.0)
        denom = jnp.sum(p, axis=1, keepdims=True)
        p = p / jnp.where(denom > 0, denom, 1.0)
        outs.append((p * ew_mat) @ xh + params["b_head"][h])
    return jnp.mean(jnp.stack(outs, 0), 0)


def init_params(key, in_channels, out_channels):
    ks = jax.random.split(key, 8)
    s_lin = 1.0 / jnp.sqrt(jnp.float32(in_channels))
    s_head = 1.0 / jnp.sqrt(jnp.float32(out_channels))
    return {
        # nn.Linear(in_channels, out_channels)
        "w_lin": jax.random.normal(ks[0], (in_channels, out_channels), jnp.float32) * s_lin,
        "b_lin": jax.random.normal(ks[1], (1, out_channels), jnp.float32) * 0.01,
        # 3 x GATConv(in_channels, out_channels, heads=1)
        "w_head": jax.random.normal(ks[2], (NUM_HEADS, out_channels, out_channels), jnp.float32) * s_head,
        "a_src": jax.random.normal(ks[3], (NUM_HEADS, 1, out_channels), jnp.float32) * s_head,
        "a_dst": jax.random.normal(ks[4], (NUM_HEADS, 1, out_channels), jnp.float32) * s_head,
        "b_head": jax.random.normal(ks[5], (NUM_HEADS, 1, out_channels), jnp.float32) * 0.01,
        # nn.Embedding(22754, 1)
        "edge_emb": jax.random.normal(ks[6], (EMB_ROWS, 1), jnp.float32) * 0.1,
    }


if __name__ == "__main__":
    key = jax.random.PRNGKey(0)
    k_par, k_x, k_e, k_w, k_d = jax.random.split(key, 5)

    N = 16            # number of graph nodes
    E = 40            # number of edges (unique)
    C_IN = 32         # module feeds lin(x) into GATConv(in_channels, ...),
    C_OUT = 32        # so in_channels == out_channels is required for shapes to match

    params = init_params(k_par, C_IN, C_OUT)

    x = jax.random.normal(k_x, (N, C_IN), jnp.float32)
    flat = jax.random.permutation(k_e, N * N)[:E]
    edge_index = jnp.stack([(flat // N).astype(jnp.int32),
                            (flat % N).astype(jnp.int32)], axis=0)       # [2, E]
    edge_weight_idx = jax.random.randint(k_w, (E, 1), 0, EMB_ROWS, jnp.int32)
    ddi_weight = jax.random.normal(k_d, (E,), jnp.float32) * 0.1

    out = gat_ho_forward(x, edge_index, edge_weight_idx, ddi_weight, params)
    out = jax.block_until_ready(out)

    ref = gat_ho_reference(x, edge_index, edge_weight_idx, ddi_weight, params)
    assert out.shape == (N, C_OUT)
    assert jnp.all(jnp.isfinite(out))
    assert jnp.allclose(out, ref, rtol=2e-2, atol=2e-2), float(jnp.max(jnp.abs(out - ref)))

    print("KERNEL_OK")
</pallas_src>

<mosaic_0001>
module attributes {stable_mosaic.version = 11 : i64} {
  func.func @_proj_kernel(%arg0: i32, %arg1: memref<64x32xf32, #tpu.memory_space<vmem>>, %arg2: memref<32x128xf32, #tpu.memory_space<vmem>>, %arg3: memref<1x128xf32, #tpu.memory_space<vmem>>, %arg4: memref<3x64x32xbf16, #tpu.memory_space<vmem>>, %arg5: memref<64x3xf32, #tpu.memory_space<vmem>>, %arg6: memref<64x3xf32, #tpu.memory_space<vmem>>) attributes {dimension_semantics = [#tpu.dimension_semantics<parallel>], iteration_bounds = array<i64: 2>, scalar_prefetch = 0 : i64, scratch_operands = 0 : i64, tpu.core_type = #tpu.core_type<tc>, window_params = [{transform_indices = @transform_0, window_bounds = array<i64: 64, 32>}, {pipeline_mode = #tpu.pipeline_mode<synchronous>, transform_indices = @transform_1, window_bounds = array<i64: 32, 128>}, {pipeline_mode = #tpu.pipeline_mode<synchronous>, transform_indices = @transform_2, window_bounds = array<i64: 1, 128>}, {transform_indices = @transform_3, window_bounds = array<i64: 3, 64, 32>}, {transform_indices = @transform_4, window_bounds = array<i64: 64, 3>}, {transform_indices = @transform_5, window_bounds = array<i64: 64, 3>}]} {
    %c0 = arith.constant 0 : index
    %c0_0 = arith.constant 0 : index
    %0 = vector.load %arg1[%c0, %c0_0] : memref<64x32xf32, #tpu.memory_space<vmem>>, vector<64x32xf32>
    %c0_1 = arith.constant 0 : index
    %c0_2 = arith.constant 0 : index
    %1 = vector.load %arg2[%c0_1, %c0_2] : memref<32x128xf32, #tpu.memory_space<vmem>>, vector<32x128xf32>
    %cst = arith.constant dense<0.000000e+00> : vector<64x128xf32>
    %2 = tpu.matmul %0, %1, %cst {dimension_numbers = #tpu.dot_dimension_numbers<[1], [0], [0], [1], [0, 0, 1, 1], [], []>} : vector<64x32xf32>, vector<32x128xf32>, vector<64x128xf32> -> vector<64x128xf32>
    %c0_3 = arith.constant 0 : index
    %c0_4 = arith.constant 0 : index
    %3 = vector.load %arg3[%c0_3, %c0_4] : memref<1x128xf32, #tpu.memory_space<vmem>>, vector<1x128xf32>
    %4 = vector.broadcast %3 : vector<1x128xf32> to vector<64x128xf32>
    %5 = arith.addf %2, %4 : vector<64x128xf32>
    %6 = vector.extract_strided_slice %5 {offsets = [0, 0], sizes = [64, 32], strides = [1, 1]} : vector<64x128xf32> to vector<64x32xf32>
    %7 = arith.truncf %6 : vector<64x32xf32> to vector<64x32xbf16>
    %c0_5 = arith.constant 0 : index
    %c0_6 = arith.constant 0 : index
    %c0_7 = arith.constant 0 : index
    %8 = vector.load %arg4[%c0_5, %c0_6, %c0_7] : memref<3x64x32xbf16, #tpu.memory_space<vmem>>, vector<1x64x32xbf16>
    %9 = vector.shape_cast %8 : vector<1x64x32xbf16> to vector<64x32xbf16>
    %10 = vector.shape_cast %7 : vector<64x32xbf16> to vector<1x64x32xbf16>
    tpu.vector_store %arg4[%c0_5, %c0_6, %c0_7], %10 {strides = array<i32>} : memref<3x64x32xbf16, #tpu.memory_space<vmem>>, vector<1x64x32xbf16>,
    %11 = vector.extract_strided_slice %5 {offsets = [0, 32], sizes = [64, 32], strides = [1, 1]} : vector<64x128xf32> to vector<64x32xf32>
    %12 = arith.truncf %11 : vector<64x32xf32> to vector<64x32xbf16>
    %c1 = arith.constant 1 : index
    %c0_8 = arith.constant 0 : index
    %c0_9 = arith.constant 0 : index
    %13 = vector.load %arg4[%c1, %c0_8, %c0_9] : memref<3x64x32xbf16, #tpu.memory_space<vmem>>, vector<1x64x32xbf16>
    %14 = vector.shape_cast %13 : vector<1x64x32xbf16> to vector<64x32xbf16>
    %15 = vector.shape_cast %12 : vector<64x32xbf16> to vector<1x64x32xbf16>
    tpu.vector_store %arg4[%c1, %c0_8, %c0_9], %15 {strides = array<i32>} : memref<3x64x32xbf16, #tpu.memory_space<vmem>>, vector<1x64x32xbf16>,
    %16 = vector.extract_strided_slice %5 {offsets = [0, 64], sizes = [64, 32], strides = [1, 1]} : vector<64x128xf32> to vector<64x32xf32>
    %17 = arith.truncf %16 : vector<64x32xf32> to vector<64x32xbf16>
    %c2 = arith.constant 2 : index
    %c0_10 = arith.constant 0 : index
    %c0_11 = arith.constant 0 : index
    %18 = vector.load %arg4[%c2, %c0_10, %c0_11] : memref<3x64x32xbf16, #tpu.memory_space<vmem>>, vector<1x64x32xbf16>
    %19 = vector.shape_cast %18 : vector<1x64x32xbf16> to vector<64x32xbf16>
    %20 = vector.shape_cast %17 : vector<64x32xbf16> to vector<1x64x32xbf16>
    tpu.vector_store %arg4[%c2, %c0_10, %c0_11], %20 {strides = array<i32>} : memref<3x64x32xbf16, #tpu.memory_space<vmem>>, vector<1x64x32xbf16>,
    %21 = vector.extract_strided_slice %5 {offsets = [0, 96], sizes = [64, 3], strides = [1, 1]} : vector<64x128xf32> to vector<64x3xf32>
    %c0_12 = arith.constant 0 : index
    %c0_13 = arith.constant 0 : index
    %22 = vector.load %arg5[%c0_12, %c0_13] : memref<64x3xf32, #tpu.memory_space<vmem>>, vector<64x3xf32>
    tpu.vector_store %arg5[%c0_12, %c0_13], %21 {strides = array<i32>} : memref<64x3xf32, #tpu.memory_space<vmem>>, vector<64x3xf32>,
    %23 = vector.extract_strided_slice %5 {offsets = [0, 99], sizes = [64, 3], strides = [1, 1]} : vector<64x128xf32> to vector<64x3xf32>
    %c0_14 = arith.constant 0 : index
    %c0_15 = arith.constant 0 : index
    %24 = vector.load %arg6[%c0_14, %c0_15] : memref<64x3xf32, #tpu.memory_space<vmem>>, vector<64x3xf32>
    tpu.vector_store %arg6[%c0_14, %c0_15], %23 {strides = array<i32>} : memref<64x3xf32, #tpu.memory_space<vmem>>, vector<64x3xf32>,
    return
  }
  func.func @transform_0(%arg0: i32) -> (i32, i32) {
    %c0_i32 = arith.constant 0 : i32
    %c0_i32_0 = arith.constant 0 : i32
    return %arg0, %c0_i32 : i32, i32
  }
  func.func @transform_1(%arg0: i32) -> (i32, i32) {
    %c0_i32 = arith.constant 0 : i32
    %c0_i32_0 = arith.constant 0 : i32
    %c0_i32_1 = arith.constant 0 : i32
    return %c0_i32, %c0_i32_0 : i32, i32
  }
  func.func @transform_2(%arg0: i32) -> (i32, i32) {
    %c0_i32 = arith.constant 0 : i32
    %c0_i32_0 = arith.constant 0 : i32
    %c0_i32_1 = arith.constant 0 : i32
    return %c0_i32, %c0_i32_0 : i32, i32
  }
  func.func @transform_3(%arg0: i32) -> (i32, i32, i32) {
    %c0_i32 = arith.constant 0 : i32
    %c0_i32_0 = arith.constant 0 : i32
    %c0_i32_1 = arith.constant 0 : i32
    return %c0_i32, %arg0, %c0_i32_0 : i32, i32, i32
  }
  func.func @transform_4(%arg0: i32) -> (i32, i32) {
    %c0_i32 = arith.constant 0 : i32
    %c0_i32_0 = arith.constant 0 : i32
    return %arg0, %c0_i32 : i32, i32
  }
  func.func @transform_5(%arg0: i32) -> (i32, i32) {
    %c0_i32 = arith.constant 0 : i32
    %c0_i32_0 = arith.constant 0 : i32
    return %arg0, %c0_i32 : i32, i32
  }
}

</mosaic_0001>

<bundles_post_ra>
// kernel: tpu_custom_call.1
= control target key start
LH: loop header
LB: loop body
LE: loop exit
PB: predicated region body
PF: predicated region fallthrough
CT: control target
= control target key end

     0   :  { %s1025_s18 = smov 0   ;;  %s1027_s19 = smov 0   ;;  %s1223_s0 = inlined_call_operand.vmem [shape: f32[128,32], index: 0, kind: input, shape index: {}]   ;;  %s1224_s1 = inlined_call_operand.vmem [shape: f32[32,128], index: 1, kind: input, shape index: {}]   ;;  %s1225_s2 = inlined_call_operand.vmem [shape: f32[1,128], index: 2, kind: input, shape index: {}]   ;;  %s1226_s3 = inlined_call_operand.vmem [shape: bf16[3,128,32], index: 3, kind: output, shape index: {0}]   ;;  %s1227_s4 = inlined_call_operand.vmem [shape: f32[128,3], index: 4, kind: output, shape index: {1}]   ;;  %s1228_s5 = inlined_call_operand.vmem [shape: f32[128,3], index: 5, kind: output, shape index: {2}]  }
   0x1   :  { %s1029_s20 = smov 0  }
   0x2 LB: > { %s1038_s21 = sadd.s32 4294967295, %s989_s20   ;;  %s1040_s22 = sadd.s32 1, %s989_s20   ;;  %s989_s20 = sphi %s1029_s20, %s1232_s20   ;;  %s985_s19 = sphi %s1027_s19, %s1231_s19   ;;  %s981_s18 = sphi %s1025_s18, %s1230_s18  }
   0x3   : > { %s88_s23 = ssub.s32 %s989_s20, %s1040_s22  ;;  %s91_s24 = sadd.s32 1, %s985_s19 }
   0x4   : > { %p89_p0 = scmp.eq.s32.totalorder %s88_s23, 0  ;;  %p101_p1 = scmp.ne.s32.totalorder %s985_s19, %s981_s18 }
   0x5   : > { %p102_p2 = scmp.eq.s32.totalorder %s1038_s21, 1  ;;  %p841_p3 = scmp.ge.s32.totalorder %s989_s20, 1 }
   0x6   : > { %s1048_s25 = scalar_select %p89_p0, %s985_s19, %s91_s24  }
   0x7   : > { %p1050_p4 = por %p102_p2, %p101_p1  ;;  %p193_p5 = scmp.lt.s32.totalorder %s989_s20, 3 }
   0x9   : > { %p194_p6 = pnand %p841_p3, %p193_p5 }
   0xa   : > { %v257_v0 = vld [vmem:[%s1224_s1] sm:$0xff] (!%p194_p6)  ;;  %v258_v1 = vld [vmem:[%s1224_s1 + $0x8] sm:$0xff] (!%p194_p6)  ;;  %v259_v2 = vld [vmem:[%s1224_s1 + $0x10] sm:$0xff] (!%p194_p6)  ;;  %s842_s8 = sshll.u32 (!%p194_p6), %s1038_s21, 3  ;;  %vm268_vm0 = vcmask (!%p194_p6), 261120   ;;  %s213_s15 = sand.u32 (!%p194_p6), 1, %s981_s18  }
   0xb   : > { %197 = sbr.rel (%p194_p6) target bundleno = 418 (0x1a2), region = 32  ;;  %v926_v3 = vpack.c.bf16 (!%p194_p6), %v258_v1, %v257_v0  ;;  %v260_v4 = vld [vmem:[%s1224_s1 + $0x18] sm:$0xff] (!%p194_p6)  ;;  %p231_p7 = scmp.lt.s32.totalorder (!%p194_p6), %s842_s8, 15  ;;  %v848_v14 = vld [vmem:[%s1225_s2] ss:$0 sm:$0xff] (!%p194_p6)  ;;  %vm430_vm1 = vcmask (!%p194_p6), 257024  }
   0xc   : > { %v930_v5 = vpack.c.bf16 (!%p194_p6), %v260_v4, %v259_v2  ;;  %s938_s20 = smul.u32 (!%p194_p6), 96, %s213_s15  ;;  %s991_s23 = smov (!%p194_p6), 32   ;;  %vm537_vm2 = vcmask (!%p194_p6), 23552  }
   0xd   : > { %927 = vmatprep.subr.bf16.mxu0 (!%p194_p6), %v926_v3  ;;  %934 = vmatprep.subr.bf16.mxu1 (!%p194_p6), %v926_v3  ;;  %s992_s24 = smov (!%p194_p6), 29   ;;  %s993_s27 = smov (!%p194_p6), 96  }
   0xe   : > { %929 = vmatpush3.bf16.msra.mxu0 (!%p194_p6), %v926_v3  ;;  %936 = vmatpush3.bf16.msra.mxu1 (!%p194_p6), %v926_v3  ;;  %s1087_s18 = scalar_lea.vmem (!%p194_p6), [#allocation2], %s938_s20  ;;  %s994_s28 = smov (!%p194_p6), 64  }
   0xf   : > { %931 = vmatprep.subr.bf16.mxu0 (!%p194_p6), %v930_v5  ;;  %935 = vmatprep.subr.bf16.mxu1 (!%p194_p6), %v930_v5 }
  0x12   : > { %s1234_s8 = smov (!%p231_p7, %s842_s8), 15  ;;  %933 = vmatpush3.bf16.msra.mxu0 %v930_v5  ;;  %937 = vmatpush3.bf16.msra.mxu1 %v930_v5  ;;  %s893_s10 = sshll.u32 (%p1050_p4), %s1038_s21, 5 }
  0x13   : > { %s1067_s11 = sshll.u32 %s1234_s8, 3  ;;  %s597_s13 = scalar_lea.vmem (%p1050_p4), %s1226_s3, %s893_s10 }
  0x14   : > { %s234_s14 = scalar_lea.vmem %s1223_s0, %s1067_s11  ;;  %s1123_s6 = scalar_lea.vmem %s1227_s4, %s1067_s11 }
  0x15   : > { %v249_v6 = vld [vmem:[%s234_s14] sm:$0xff]  ;;  %v250_v8 = vld [vmem:[%s234_s14 + $0x8] sm:$0xff]  ;;  %v251_v10 = vld [vmem:[%s234_s14 + $0x10] sm:$0xff]  ;;  %s1137_s9 = scalar_lea.vmem %s1228_s5, %s1067_s11 }
  0x16   : > { %v253_v7 = vld [vmem:[%s234_s14 + $0x20] sm:$0xff]  ;;  %914 = vmatprep.mubr.msk.f32.mxu0 %vm268_vm0, %v249_v6  ;;  %v254_v9 = vld [vmem:[%s234_s14 + $0x28] sm:$0xff]  ;;  %v255_v11 = vld [vmem:[%s234_s14 + $0x30] sm:$0xff] }
  0x17   : > { %920 = vmatprep.mubr.msk.f32.mxu1 %vm268_vm0, %v253_v7  ;;  %915 = vmatmul.mubr.msk.f32.vlgmr.msra.gmra.mrb[0].mxu0 %vm268_vm0, %v250_v8  ;;  %v252_v12 = vld [vmem:[%s234_s14 + $0x18] sm:$0xff] }
  0x18   : > { %921 = vmatmul.mubr.msk.f32.vlgmr.msra.gmra.mrb[0].mxu1 %vm268_vm0, %v254_v9  ;;  %917 = vmatprep.mubr.msk.f32.mxu0 %vm268_vm0, %v251_v10  ;;  %v256_v13 = vld [vmem:[%s234_s14 + $0x38] sm:$0xff] }
  0x19   : > { %923 = vmatprep.mubr.msk.f32.mxu1 %vm268_vm0, %v255_v11 }
  0x1b   : > { %918 = vmatmul.mubr.msk.f32.gmra.mrb[2].mxu0 %vm268_vm0, %v252_v12 }
  0x1c   : > { %924 = vmatmul.mubr.msk.f32.gmra.mrb[2].mxu1 %vm268_vm0, %v256_v13 }
  0xea   : > { %v916_v15 = vpop.f32.mrb[0].mxu0 }
  0xeb   : > { %v365_v16 = vadd.f32 %v916_v15, %v848_v14  ;;  %v359_v17 = vpop.f32.mrb[1].mxu0  ;;  %v922_v18 = vpop.f32.mrb[0].mxu1 }
  0xec   : > { %v360_v19 = vadd.f32 %v848_v14, %v359_v17  ;;  %v385_v20 = vadd.f32 %v922_v18, %v848_v14  ;;  %v379_v21 = vpop.f32.mrb[1].mxu1 }
  0xed   : > { %515 = vrot.lane.b32.xlu1 %v365_v16, %s991_s23  ;;  %v380_v22 = vadd.f32 %v848_v14, %v379_v21  ;;  %v886_v23 = vpack.c.bf16 %v365_v16, %v365_v16 }
  0xee   : > { %513 = vrot.lane.b32.xlu0 %v360_v19, %s991_s23  ;;  %v890_v24 = vpack.c.bf16 %v385_v20, %v385_v20  ;;  %v885_v25 = vpack.c.bf16 %v360_v19, %v360_v19  ;;  %v919_v26 = vpop.f32.mrb[2].mxu0 }
  0xef   : > { %432 = vst.msk [vmem:[%s1087_s18 + $0x4] sm:$0xf] %vm430_vm1, %v886_v23  ;;  %v375_v27 = vadd.f32 %v919_v26, %v848_v14  ;;  %v889_v28 = vpack.c.bf16 %v380_v22, %v380_v22  ;;  %v369_v29 = vpop.f32.mrb[3].mxu0  ;;  %v925_v30 = vpop.f32.mrb[2].mxu1 }
  0xf0   : > { %436 = vst.msk [vmem:[%s1087_s18 + $0x14] sm:$0xf] %vm430_vm1, %v890_v24  ;;  %431 = vst.msk [vmem:[%s1087_s18] sm:$0xf] %vm430_vm1, %v885_v25  ;;  %v370_v31 = vadd.f32 %v848_v14, %v369_v29  ;;  %v395_v32 = vadd.f32 %v925_v30, %v848_v14  ;;  %v389_v33 = vpop.f32.mrb[3].mxu1 }
  0xf1   : > { %523 = vrot.lane.b32.xlu1 %v385_v20, %s991_s23  ;;  %435 = vst.msk [vmem:[%s1087_s18 + $0x10] sm:$0xf] %vm430_vm1, %v889_v28  ;;  %v390_v34 = vadd.f32 %v848_v14, %v389_v33  ;;  %v888_v35 = vpack.c.bf16 %v375_v27, %v375_v27 }
  0xf2   : > { %521 = vrot.lane.b32.xlu0 %v380_v22, %s991_s23  ;;  %v892_v36 = vpack.c.bf16 %v395_v32, %v395_v32  ;;  %v887_v37 = vpack.c.bf16 %v370_v31, %v370_v31 }
  0xf3   : > { %434 = vst.msk [vmem:[%s1087_s18 + $0xc] sm:$0xf] %vm430_vm1, %v888_v35  ;;  %v891_v38 = vpack.c.bf16 %v390_v34, %v390_v34 }
  0xf4   : > { %438 = vst.msk [vmem:[%s1087_s18 + $0x1c] sm:$0xf] %vm430_vm1, %v892_v36  ;;  %433 = vst.msk [vmem:[%s1087_s18 + $0x8] sm:$0xf] %vm430_vm1, %v887_v37 }
  0xf5   : > { %548 = vrot.lane.b32.xlu1 %v365_v16, %s992_s24  ;;  %437 = vst.msk [vmem:[%s1087_s18 + $0x18] sm:$0xf] %vm430_vm1, %v891_v38 }
  0xf6   : > { %546 = vrot.lane.b32.xlu0 %v360_v19, %s992_s24 }
  0xf7   : > { %v613_v7 = vld [vmem:[%s1087_s18] sm:$0xff] (%p1050_p4)  }
  0xf8   : > { %v621_v9 = vld [vmem:[%s1087_s18 + $0x10] sm:$0xff] (%p1050_p4)   ;;  %614 = vst [vmem:[%s597_s13] sm:$0xff] (%p1050_p4), %v613_v7  }
  0xf9   : > { %556 = vrot.lane.b32.xlu1 %v385_v20, %s992_s24  ;;  %622 = vst [vmem:[%s597_s13 + $0x10] sm:$0xff] (%p1050_p4), %v621_v9  }
  0xfa   : > { %554 = vrot.lane.b32.xlu0 %v380_v22, %s992_s24 }
  0xfb   : > { %v617_v8 = vld [vmem:[%s1087_s18 + $0x8] sm:$0xff] (%p1050_p4)  }
  0xfc   : > { %v625_v10 = vld [vmem:[%s1087_s18 + $0x18] sm:$0xff] (%p1050_p4)   ;;  %618 = vst [vmem:[%s597_s13 + $0x8] sm:$0xff] (%p1050_p4), %v617_v8  }
  0xfd   : > { %449 = vrot.lane.b32.xlu1 %v890_v24, %s993_s27  ;;  %626 = vst [vmem:[%s597_s13 + $0x18] sm:$0xff] (%p1050_p4), %v625_v10  }
  0xfe   : > { %441 = vrot.lane.b32.xlu0 %v886_v23, %s993_s27 }
 0x101   : > { %474 = vrot.lane.b32.xlu1 %v886_v23, %s994_s28 }
 0x102   : > { %439 = vrot.lane.b32.xlu0 %v885_v25, %s993_s27 }
 0x105   : > { %482 = vrot.lane.b32.xlu1 %v890_v24, %s994_s28 }
 0x106   : > { %447 = vrot.lane.b32.xlu0 %v889_v28, %s993_s27 }
 0x109   : > { %519 = vrot.lane.b32.xlu1 %v375_v27, %s991_s23 }
 0x10a   : > { %472 = vrot.lane.b32.xlu0 %v885_v25, %s994_s28 }
 0x10d   : > { %527 = vrot.lane.b32.xlu1 %v395_v32, %s991_s23 }
 0x10e   : > { %480 = vrot.lane.b32.xlu0 %v889_v28, %s994_s28 }
 0x111   : > { %552 = vrot.lane.b32.xlu1 %v375_v27, %s992_s24 }
 0x112   : > { %517 = vrot.lane.b32.xlu0 %v370_v31, %s991_s23 }
 0x115   : > { %445 = vrot.lane.b32.xlu1 %v888_v35, %s993_s27 }
 0x116   : > { %525 = vrot.lane.b32.xlu0 %v390_v34, %s991_s23 }
 0x119   : > { %453 = vrot.lane.b32.xlu1 %v892_v36, %s993_s27 }
 0x11a   : > { %550 = vrot.lane.b32.xlu0 %v370_v31, %s992_s24 }
 0x11d   : > { %478 = vrot.lane.b32.xlu1 %v888_v35, %s994_s28 }
 0x11e   : > { %451 = vrot.lane.b32.xlu0 %v891_v38, %s993_s27 }
 0x121   : > { %486 = vrot.lane.b32.xlu1 %v892_v36, %s994_s28 }
 0x122   : > { %476 = vrot.lane.b32.xlu0 %v887_v37, %s994_s28 }
 0x125   : > { %443 = vrot.lane.b32.xlu1 %v887_v37, %s993_s27 }
 0x126   : > { %484 = vrot.lane.b32.xlu0 %v891_v38, %s994_s28 }
 0x129   : > { %560 = vrot.lane.b32.xlu1 %v395_v32, %s992_s24 }
 0x12a   : > { %558 = vrot.lane.b32.xlu0 %v390_v34, %s992_s24 }
 0x15f   : > { %v516_v39 = vpop.permute.xlu1 %515 }
 0x160   : > { %539 = vst.msk [vmem:[%s1123_s6 + $0x8] sm:$0xff] %vm537_vm2, %v516_v39  ;;  %v514_v40 = vpop.permute.xlu0 %513 }
 0x161   : > { %538 = vst.msk [vmem:[%s1123_s6] sm:$0xff] %vm537_vm2, %v514_v40 }
 0x163   : > { %v524_v41 = vpop.permute.xlu1 %523 }
 0x164   : > { %543 = vst.msk [vmem:[%s1123_s6 + $0x28] sm:$0xff] %vm537_vm2, %v524_v41  ;;  %v522_v42 = vpop.permute.xlu0 %521 }
 0x165   : > { %542 = vst.msk [vmem:[%s1123_s6 + $0x20] sm:$0xff] %vm537_vm2, %v522_v42 }
 0x167   : > { %v549_v43 = vpop.permute.xlu1 %548 }
 0x168   : > { %571 = vst.msk [vmem:[%s1137_s9 + $0x8] sm:$0xff] %vm537_vm2, %v549_v43  ;;  %v547_v44 = vpop.permute.xlu0 %546 }
 0x169   : > { %570 = vst.msk [vmem:[%s1137_s9] sm:$0xff] %vm537_vm2, %v547_v44 }
 0x16b   : > { %v557_v45 = vpop.permute.xlu1 %556 }
 0x16c   : > { %575 = vst.msk [vmem:[%s1137_s9 + $0x28] sm:$0xff] %vm537_vm2, %v557_v45  ;;  %v555_v46 = vpop.permute.xlu0 %554 }
 0x16d   : > { %574 = vst.msk [vmem:[%s1137_s9 + $0x20] sm:$0xff] %vm537_vm2, %v555_v46 }
 0x16f   : > { %v450_v47 = vpop.permute.xlu1 %449 }
 0x170   : > { %870 = vst.msk [vmem:[%s1087_s18 + $0x34] sm:$0xf] %vm430_vm1, %v450_v47  ;;  %v442_v48 = vpop.permute.xlu0 %441 }
 0x171   : > { %866 = vst.msk [vmem:[%s1087_s18 + $0x24] sm:$0xf] %vm430_vm1, %v442_v48 }
 0x173   : > { %v475_v49 = vpop.permute.xlu1 %474 }
 0x174   : > { %874 = vst.msk [vmem:[%s1087_s18 + $0x44] sm:$0xf] %vm430_vm1, %v475_v49  ;;  %v440_v50 = vpop.permute.xlu0 %439 }
 0x175   : > { %865 = vst.msk [vmem:[%s1087_s18 + $0x20] sm:$0xf] %vm430_vm1, %v440_v50 }
 0x177   : > { %v483_v51 = vpop.permute.xlu1 %482 }
 0x178   : > { %878 = vst.msk [vmem:[%s1087_s18 + $0x54] sm:$0xf] %vm430_vm1, %v483_v51  ;;  %v448_v52 = vpop.permute.xlu0 %447 }
 0x179   : > { %869 = vst.msk [vmem:[%s1087_s18 + $0x30] sm:$0xf] %vm430_vm1, %v448_v52 }
 0x17b   : > { %v520_v53 = vpop.permute.xlu1 %519 }
 0x17c   : > { %541 = vst.msk [vmem:[%s1123_s6 + $0x18] sm:$0xff] %vm537_vm2, %v520_v53  ;;  %v473_v54 = vpop.permute.xlu0 %472  ;;  %v629_v11 = vld [vmem:[%s1087_s18 + $0x20] sm:$0xff] (%p1050_p4)  }
 0x17d   : > { %873 = vst.msk [vmem:[%s1087_s18 + $0x40] sm:$0xf] %vm430_vm1, %v473_v54  ;;  %630 = vst [vmem:[%s597_s13 + $0x40] sm:$0xff] (%p1050_p4), %v629_v11  }
 0x17f   : > { %v528_v55 = vpop.permute.xlu1 %527 }
 0x180   : > { %545 = vst.msk [vmem:[%s1123_s6 + $0x38] sm:$0xff] %vm537_vm2, %v528_v55  ;;  %v481_v56 = vpop.permute.xlu0 %480  ;;  %v637_v13 = vld [vmem:[%s1087_s18 + $0x30] sm:$0xff] (%p1050_p4)  }
 0x181   : > { %877 = vst.msk [vmem:[%s1087_s18 + $0x50] sm:$0xf] %vm430_vm1, %v481_v56  ;;  %638 = vst [vmem:[%s597_s13 + $0x50] sm:$0xff] (%p1050_p4), %v637_v13  }
 0x183   : > { %v553_v57 = vpop.permute.xlu1 %552 }
 0x184   : > { %573 = vst.msk [vmem:[%s1137_s9 + $0x18] sm:$0xff] %vm537_vm2, %v553_v57  ;;  %v518_v58 = vpop.permute.xlu0 %517  ;;  %v645_v15 = vld [vmem:[%s1087_s18 + $0x40] sm:$0xff] (%p1050_p4)  }
 0x185   : > { %540 = vst.msk [vmem:[%s1123_s6 + $0x10] sm:$0xff] %vm537_vm2, %v518_v58  ;;  %646 = vst [vmem:[%s597_s13 + $0x80] sm:$0xff] (%p1050_p4), %v645_v15  }
 0x187   : > { %v446_v59 = vpop.permute.xlu1 %445 }
 0x188   : > { %868 = vst.msk [vmem:[%s1087_s18 + $0x2c] sm:$0xf] %vm430_vm1, %v446_v59  ;;  %v526_v60 = vpop.permute.xlu0 %525  ;;  %v653_v17 = vld [vmem:[%s1087_s18 + $0x50] sm:$0xff] (%p1050_p4)  }
 0x189   : > { %544 = vst.msk [vmem:[%s1123_s6 + $0x30] sm:$0xff] %vm537_vm2, %v526_v60  ;;  %654 = vst [vmem:[%s597_s13 + $0x90] sm:$0xff] (%p1050_p4), %v653_v17  }
 0x18b   : > { %v454_v61 = vpop.permute.xlu1 %453 }
 0x18c   : > { %872 = vst.msk [vmem:[%s1087_s18 + $0x3c] sm:$0xf] %vm430_vm1, %v454_v61  ;;  %v551_v62 = vpop.permute.xlu0 %550 }
 0x18d   : > { %572 = vst.msk [vmem:[%s1137_s9 + $0x10] sm:$0xff] %vm537_vm2, %v551_v62 }
 0x18f   : > { %v479_v63 = vpop.permute.xlu1 %478 }
 0x190   : > { %876 = vst.msk [vmem:[%s1087_s18 + $0x4c] sm:$0xf] %vm430_vm1, %v479_v63  ;;  %v452_v0 = vpop.permute.xlu0 %451 }
 0x191   : > { %871 = vst.msk [vmem:[%s1087_s18 + $0x38] sm:$0xf] %vm430_vm1, %v452_v0 }
 0x193   : > { %v487_v1 = vpop.permute.xlu1 %486 }
 0x194   : > { %880 = vst.msk [vmem:[%s1087_s18 + $0x5c] sm:$0xf] %vm430_vm1, %v487_v1  ;;  %v477_v2 = vpop.permute.xlu0 %476 }
 0x195   : > { %875 = vst.msk [vmem:[%s1087_s18 + $0x48] sm:$0xf] %vm430_vm1, %v477_v2 }
 0x197   : > { %v444_v3 = vpop.permute.xlu1 %443  ;;  %594 = sbr.rel (!%p1050_p4) target bundleno = 418 (0x1a2), region = 36 }
 0x198   : > { %867 = vst.msk [vmem:[%s1087_s18 + $0x28] sm:$0xf] %vm430_vm1, %v444_v3  ;;  %v485_v4 = vpop.permute.xlu0 %484  ;;  %v641_v14 = vld [vmem:[%s1087_s18 + $0x38] sm:$0xff] (%p1050_p4)  }
 0x199   : > { %879 = vst.msk [vmem:[%s1087_s18 + $0x58] sm:$0xf] %vm430_vm1, %v485_v4  ;;  %642 = vst [vmem:[%s597_s13 + $0x58] sm:$0xff] (%p1050_p4), %v641_v14  }
 0x19b   : > { %v561_v5 = vpop.permute.xlu1 %560 }
 0x19c   : > { %577 = vst.msk [vmem:[%s1137_s9 + $0x38] sm:$0xff] %vm537_vm2, %v561_v5  ;;  %v559_v6 = vpop.permute.xlu0 %558  ;;  %v649_v16 = vld [vmem:[%s1087_s18 + $0x48] sm:$0xff] (%p1050_p4)  }
 0x19d   : > { %576 = vst.msk [vmem:[%s1137_s9 + $0x30] sm:$0xff] %vm537_vm2, %v559_v6  ;;  %650 = vst [vmem:[%s597_s13 + $0x88] sm:$0xff] (%p1050_p4), %v649_v16  }
 0x19f   : > { %v633_v12 = vld [vmem:[%s1087_s18 + $0x28] sm:$0xff]  }
 0x1a0   : > { %634 = vst [vmem:[%s597_s13 + $0x48] sm:$0xff] %v633_v12   ;;  %v657_v18 = vld [vmem:[%s1087_s18 + $0x58] sm:$0xff]  }
 0x1a1   : > { %658 = vst [vmem:[%s597_s13 + $0x98] sm:$0xff] %v657_v18  }
 0x1a2 PF: > { %p13_p8 = scmp.ge.s32.totalorder %s1040_s22, 4   ;;  %s1230_s18 = smov %s985_s19 }
 0x1a3   : > { %s1231_s19 = smov %s1048_s25  ;;  %s1232_s20 = smov %s1040_s22 }
 0x1a4   :  { %15 = sbr.rel (!%p13_p8) target bundleno = 2 (0x2), region = 129 }

</bundles_post_ra>
